<compile_context>
chip_gen: v7x
topology: tpu7x:2x2x1
jax: 0.10.0
libtpu: 0.0.40
codegen_flags: <defaults>
</compile_context>

<pallas_src>
import math

import jax
import jax.numpy as jnp
from jax.experimental import pallas as pl
from jax.experimental.pallas import tpu as pltpu


def _prenet_kernel(x_ref, *refs):
    """refs = (w0_t, m0, w1_t, m1, ..., o_ref).  wK_t is (d_in_k, d_out_k)."""
    o_ref = refs[-1]
    layer_refs = refs[:-1]
    n_layers = len(layer_refs) // 2
    h = x_ref[...].astype(jnp.float32)
    for layer in range(n_layers):                  # unrolled at trace time
        w_t = layer_refs[2 * layer][...].astype(jnp.float32)
        m = layer_refs[2 * layer + 1][...].astype(jnp.float32)
        # (TM, d_in) @ (d_in, d_out) -> (TM, d_out); lane dim = d_out.
        h = jnp.dot(h, w_t, preferred_element_type=jnp.float32)
        h = jnp.maximum(h, 0.0) * m                # fused ReLU + dropout
    o_ref[...] = h.astype(o_ref.dtype)


def _round_up(x, m):
    return ((x + m - 1) // m) * m


def _choose_row_tile(n_rows, row_bytes, fixed_bytes,
                     vmem_budget_bytes=12 * 1024 * 1024):
    """Row tile keeping 2x (double-buffered) blocks within a v7x-safe budget."""
    avail = max(vmem_budget_bytes - 2 * fixed_bytes, 1)
    tm = avail // max(2 * row_bytes, 1)
    tm = max(8, min(tm, 4096))
    tm = (tm // 8) * 8                              # sublane granule (f32)
    tm = min(tm, _round_up(n_rows, 8))
    return max(tm, 8)


def prenet_pallas_forward(x2d, weights, masks_scaled):
    """x2d: (N, d_in); weights: [(d_out_k, d_in_k)]; masks: [(N, d_out_k)]."""
    n, d_in = x2d.shape
    d_out = weights[-1].shape[0]
    layer_sizes = [w.shape[0] for w in weights]
    itemsize = jnp.dtype(x2d.dtype).itemsize

    # Pre-transpose once in the wrapper so the kernel never transposes.
    weights_t = [w.T.astype(x2d.dtype) for w in weights]   # (d_in_k, d_out_k)
    weight_elems = sum(int(w.size) for w in weights_t)

    row_bytes = (d_in + sum(layer_sizes) + d_out) * itemsize
    tm = _choose_row_tile(n, row_bytes, weight_elems * itemsize)

    n_pad = _round_up(n, tm)
    if n_pad != n:
        pad = n_pad - n
        x2d = jnp.pad(x2d, ((0, pad), (0, 0)))
        masks_scaled = [jnp.pad(m, ((0, pad), (0, 0))) for m in masks_scaled]

    grid = (n_pad // tm,)

    inputs = [x2d]
    in_specs = [pl.BlockSpec((tm, d_in), lambda i: (i, 0))]
    for w_t, m in zip(weights_t, masks_scaled):
        di, do = w_t.shape
        inputs.append(w_t)
        in_specs.append(pl.BlockSpec((di, do), lambda i: (0, 0)))  # shared
        inputs.append(m)
        in_specs.append(pl.BlockSpec((tm, do), lambda i: (i, 0)))

    flops = sum(2 * n_pad * w.shape[0] * w.shape[1] for w in weights)
    bytes_accessed = itemsize * (
        n_pad * (d_in + sum(layer_sizes) + d_out) + weight_elems)

    out = pl.pallas_call(
        _prenet_kernel,
        out_shape=jax.ShapeDtypeStruct((n_pad, d_out), x2d.dtype),
        grid=grid,
        in_specs=in_specs,
        out_specs=pl.BlockSpec((tm, d_out), lambda i: (i, 0)),
        compiler_params=pltpu.CompilerParams(
            dimension_semantics=("parallel",),
        ),
        cost_estimate=pl.CostEstimate(
            flops=flops, transcendentals=0, bytes_accessed=bytes_accessed),
    )(*inputs)
    return out[:n]


class Prenet:
    """JAX/Pallas port of nemo Prenet: LinearNorm(bias=False) -> ReLU -> dropout."""

    def __init__(self, in_dim, sizes, p_dropout=0.5, *, key):
        self.in_dim = in_dim
        self.sizes = list(sizes)
        self.p_dropout = float(p_dropout)
        in_sizes = [in_dim] + self.sizes[:-1]
        self.weights = []
        for d_in, d_out in zip(in_sizes, self.sizes):
            key, sub = jax.random.split(key)
            # xavier_uniform_ with gain('linear') == 1.
            limit = math.sqrt(6.0 / (d_in + d_out))
            self.weights.append(
                jax.random.uniform(sub, (d_out, d_in), jnp.float32,
                                   -limit, limit))

    def _dropout_masks(self, n_rows, key, inference):
        # TODO(synk): bit-exact parity with torch's RNG stream is not possible;
        # dropout masks are drawn with jax.random (same distribution/semantics).
        keep = 1.0 - self.p_dropout
        masks = []
        for size in self.sizes:
            key, sub = jax.random.split(key)
            if inference:
                # PyTorch inference path (2D decoder-step input): one mask row
                # drawn from x[0]'s shape, shared across the batch dimension.
                m = jax.random.bernoulli(sub, keep, (1, size))
                m = jnp.broadcast_to(m, (n_rows, size))
            else:
                m = jax.random.bernoulli(sub, keep, (n_rows, size))
            masks.append(m.astype(jnp.float32) / keep)
        return masks

    def __call__(self, x, *, key, inference=False):
        lead = x.shape[:-1]
        x2d = x.reshape(-1, self.in_dim)
        masks = self._dropout_masks(x2d.shape[0], key, inference)
        out2d = prenet_pallas_forward(x2d, self.weights, masks)
        return out2d.reshape(*lead, self.sizes[-1])

    def reference(self, x, *, key, inference=False):
        """Pure-JAX reference with the identical dropout masks."""
        lead = x.shape[:-1]
        h = x.reshape(-1, self.in_dim)
        masks = self._dropout_masks(h.shape[0], key, inference)
        for w, m in zip(self.weights, masks):
            h = jnp.maximum(h @ w.T, 0.0) * m
        return h.reshape(*lead, self.sizes[-1])


if __name__ == "__main__":
    key = jax.random.PRNGKey(0)
    k_init, k_x, k_drop, k_xd, k_drop2 = jax.random.split(key, 5)

    B, T, IN_DIM = 2, 16, 32
    SIZES = [32, 32]

    prenet = Prenet(IN_DIM, SIZES, p_dropout=0.5, key=k_init)

    # Training-style forward (inference=False): per-element dropout.
    x = jax.random.normal(k_x, (B, T, IN_DIM), dtype=jnp.float32)
    out = jax.block_until_ready(prenet(x, key=k_drop, inference=False))
    ref = prenet.reference(x, key=k_drop, inference=False)
    assert out.shape == (B, T, SIZES[-1])
    assert jnp.allclose(out, ref, atol=2e-2, rtol=2e-2), float(
        jnp.max(jnp.abs(out - ref)))

    # Inference path (2D decoder-step input): one mask shared across the batch.
    xd = jax.random.normal(k_xd, (B, IN_DIM), dtype=jnp.float32)
    out_inf = jax.block_until_ready(prenet(xd, key=k_drop2, inference=True))
    ref_inf = prenet.reference(xd, key=k_drop2, inference=True)
    assert out_inf.shape == (B, SIZES[-1])
    assert jnp.allclose(out_inf, ref_inf, atol=2e-2, rtol=2e-2), float(
        jnp.max(jnp.abs(out_inf - ref_inf)))

    print("KERNEL_OK")
</pallas_src>

<mosaic_0001>
module attributes {stable_mosaic.version = 11 : i64} {
  func.func @_prenet_kernel(%arg0: i32, %arg1: memref<32x32xf32, #tpu.memory_space<vmem>>, %arg2: memref<32x32xf32, #tpu.memory_space<vmem>>, %arg3: memref<32x32xf32, #tpu.memory_space<vmem>>, %arg4: memref<32x32xf32, #tpu.memory_space<vmem>>, %arg5: memref<32x32xf32, #tpu.memory_space<vmem>>, %arg6: memref<32x32xf32, #tpu.memory_space<vmem>>) attributes {dimension_semantics = [#tpu.dimension_semantics<parallel>], iteration_bounds = array<i64: 1>, scalar_prefetch = 0 : i64, scratch_operands = 0 : i64, tpu.core_type = #tpu.core_type<tc>, window_params = [{transform_indices = @transform_0, window_bounds = array<i64: 32, 32>}, {pipeline_mode = #tpu.pipeline_mode<synchronous>, transform_indices = @transform_1, window_bounds = array<i64: 32, 32>}, {transform_indices = @transform_2, window_bounds = array<i64: 32, 32>}, {pipeline_mode = #tpu.pipeline_mode<synchronous>, transform_indices = @transform_3, window_bounds = array<i64: 32, 32>}, {transform_indices = @transform_4, window_bounds = array<i64: 32, 32>}, {transform_indices = @transform_5, window_bounds = array<i64: 32, 32>}]} {
    %c0 = arith.constant 0 : index
    %c0_0 = arith.constant 0 : index
    %0 = vector.load %arg1[%c0, %c0_0] : memref<32x32xf32, #tpu.memory_space<vmem>>, vector<32x32xf32>
    %c0_1 = arith.constant 0 : index
    %c0_2 = arith.constant 0 : index
    %1 = vector.load %arg2[%c0_1, %c0_2] : memref<32x32xf32, #tpu.memory_space<vmem>>, vector<32x32xf32>
    %c0_3 = arith.constant 0 : index
    %c0_4 = arith.constant 0 : index
    %2 = vector.load %arg3[%c0_3, %c0_4] : memref<32x32xf32, #tpu.memory_space<vmem>>, vector<32x32xf32>
    %cst = arith.constant dense<0.000000e+00> : vector<32x32xf32>
    %3 = tpu.matmul %0, %1, %cst {dimension_numbers = #tpu.dot_dimension_numbers<[1], [0], [0], [1], [0, 0, 1, 1], [], []>} : vector<32x32xf32>, vector<32x32xf32>, vector<32x32xf32> -> vector<32x32xf32>
    %cst_5 = arith.constant 0.000000e+00 : f32
    %4 = vector.broadcast %cst_5 : f32 to vector<32x32xf32>
    %5 = arith.maximumf %3, %4 : vector<32x32xf32>
    %6 = arith.mulf %5, %2 : vector<32x32xf32>
    %c0_6 = arith.constant 0 : index
    %c0_7 = arith.constant 0 : index
    %7 = vector.load %arg4[%c0_6, %c0_7] : memref<32x32xf32, #tpu.memory_space<vmem>>, vector<32x32xf32>
    %c0_8 = arith.constant 0 : index
    %c0_9 = arith.constant 0 : index
    %8 = vector.load %arg5[%c0_8, %c0_9] : memref<32x32xf32, #tpu.memory_space<vmem>>, vector<32x32xf32>
    %cst_10 = arith.constant dense<0.000000e+00> : vector<32x32xf32>
    %9 = tpu.matmul %6, %7, %cst_10 {dimension_numbers = #tpu.dot_dimension_numbers<[1], [0], [0], [1], [0, 0, 1, 1], [], []>} : vector<32x32xf32>, vector<32x32xf32>, vector<32x32xf32> -> vector<32x32xf32>
    %cst_11 = arith.constant 0.000000e+00 : f32
    %10 = vector.broadcast %cst_11 : f32 to vector<32x32xf32>
    %11 = arith.maximumf %9, %10 : vector<32x32xf32>
    %12 = arith.mulf %11, %8 : vector<32x32xf32>
    %c0_12 = arith.constant 0 : index
    %c0_13 = arith.constant 0 : index
    %13 = vector.load %arg6[%c0_12, %c0_13] : memref<32x32xf32, #tpu.memory_space<vmem>>, vector<32x32xf32>
    tpu.vector_store %arg6[%c0_12, %c0_13], %12 {strides = array<i32>} : memref<32x32xf32, #tpu.memory_space<vmem>>, vector<32x32xf32>,
    return
  }
  func.func @transform_0(%arg0: i32) -> (i32, i32) {
    %c0_i32 = arith.constant 0 : i32
    %c0_i32_0 = arith.constant 0 : i32
    return %arg0, %c0_i32 : i32, i32
  }
  func.func @transform_1(%arg0: i32) -> (i32, i32) {
    %c0_i32 = arith.constant 0 : i32
    %c0_i32_0 = arith.constant 0 : i32
    %c0_i32_1 = arith.constant 0 : i32
    return %c0_i32, %c0_i32_0 : i32, i32
  }
  func.func @transform_2(%arg0: i32) -> (i32, i32) {
    %c0_i32 = arith.constant 0 : i32
    %c0_i32_0 = arith.constant 0 : i32
    return %arg0, %c0_i32 : i32, i32
  }
  func.func @transform_3(%arg0: i32) -> (i32, i32) {
    %c0_i32 = arith.constant 0 : i32
    %c0_i32_0 = arith.constant 0 : i32
    %c0_i32_1 = arith.constant 0 : i32
    return %c0_i32, %c0_i32_0 : i32, i32
  }
  func.func @transform_4(%arg0: i32) -> (i32, i32) {
    %c0_i32 = arith.constant 0 : i32
    %c0_i32_0 = arith.constant 0 : i32
    return %arg0, %c0_i32 : i32, i32
  }
  func.func @transform_5(%arg0: i32) -> (i32, i32) {
    %c0_i32 = arith.constant 0 : i32
    %c0_i32_0 = arith.constant 0 : i32
    return %arg0, %c0_i32 : i32, i32
  }
}

</mosaic_0001>

<bundles_post_ra>
// kernel: tpu_custom_call.1
= control target key start
LH: loop header
LB: loop body
LE: loop exit
PB: predicated region body
PF: predicated region fallthrough
CT: control target
= control target key end

     0   :  { %10 = vsyncpa [#allocation3], 0  ;;  %s713_s0 = inlined_call_operand.hbm [shape: f32[32,32], index: 0, kind: input, shape index: {}]   ;;  %s714_s1 = inlined_call_operand.hbm [shape: f32[32,32], index: 1, kind: input, shape index: {}]   ;;  %s715_s2 = inlined_call_operand.hbm [shape: f32[32,32], index: 2, kind: input, shape index: {}]   ;;  %s716_s3 = inlined_call_operand.hbm [shape: f32[32,32], index: 3, kind: input, shape index: {}]   ;;  %s717_s4 = inlined_call_operand.hbm [shape: f32[32,32], index: 4, kind: input, shape index: {}]   ;;  %s718_s5 = inlined_call_operand.hbm [shape: f32[32,32], index: 5, kind: output, shape index: {}]  }
   0x1   :  { %11 = vsyncpa [#allocation6], 0 }
   0x2   :  { %12 = vsyncpa [#allocation9], 0 }
   0x3   :  { %13 = vsyncpa [#allocation4], 0  ;;  %s559_s18 = smov [#allocation5]   ;;  %s560_s20 = smov [#allocation8]  }
   0x4   :  { %s31_s19 = sshll.u32 %s559_s18, 4  ;;  %s55_s21 = sshll.u32 %s560_s20, 4  ;;  %s32_s19 = int_to_ptr.vmem [resolvable:$true] %s31_s19  ;;  %s597_s21 = int_to_ptr.vmem [resolvable:$true] %s55_s21 }
   0x5   :  { %s419_s24 = scalar_lea.hbm %s714_s1, 512 }
   0x6   :  { %p420_p0 = scmp.ne.s32.totalorder %s714_s1, %s419_s24  ;;  %p423_p1 = scmp.lt.u32.totalorder %s419_s24, %s714_s1 }
   0x8   :  { %p425_p2 = pnand %p423_p1, %p420_p0 }
   0xa   :  { %428 = shalt.err (!%p425_p2)
}
   0xb   :  { %s429_s29 = scalar_lea.vmem %s32_s19, 512  ;;  %p434_p4 = scmp.lt.s32.totalorder %s32_s19, %s32_s19 }
   0xc   :  { %p430_p3 = scmp.ne.s32.totalorder %s32_s19, %s429_s29  ;;  %p435_p5 = scmp.lt.s32.totalorder %s429_s29, %s429_s29 }
   0xe   :  { %p436_p6 = por %p435_p5, %p434_p4 }
  0x10   :  { %p437_p7 = pnand %p436_p6, %p430_p3 }
  0x12   :  { %440 = shalt.err (!%p437_p7)
}
  0x13   :  { %s561_s30 = smov 128   ;;  %s562_s6 = smov 8  }
  0x14   :  { %37 = dma.hbm_to_vmem [thread:$0]  %s714_s1, 512, %s32_s19, [#allocation6], %s561_s30, %s561_s30, %s562_s6  }
  0x15   :  { %s441_s11 = scalar_lea.hbm %s716_s3, 512 }
  0x16   :  { %p442_p8 = scmp.ne.s32.totalorder %s716_s3, %s441_s11  ;;  %p445_p9 = scmp.lt.u32.totalorder %s441_s11, %s716_s3 }
  0x18   :  { %p447_p10 = pnand %p445_p9, %p442_p8 }
  0x1a   :  { %450 = shalt.err (!%p447_p10)
}
  0x1b   :  { %s451_s16 = scalar_lea.vmem %s597_s21, 512  ;;  %p456_p12 = scmp.lt.s32.totalorder %s597_s21, %s597_s21 }
  0x1c   :  { %p452_p11 = scmp.ne.s32.totalorder %s597_s21, %s451_s16  ;;  %p457_p13 = scmp.lt.s32.totalorder %s451_s16, %s451_s16 }
  0x1e   :  { %p458_p0 = por %p457_p13, %p456_p12 }
  0x20   :  { %p459_p1 = pnand %p458_p0, %p452_p11 }
  0x22   :  { %462 = shalt.err (!%p459_p1)
}
  0x23   :  { %61 = dma.hbm_to_vmem [thread:$0]  %s716_s3, 512, %s597_s21, [#allocation9], %s561_s30, %s561_s30, %s562_s6  }
  0x24   :  { %s563_s18 = smov [#allocation2]   ;;  %s564_s20 = smov [#allocation7]  }
  0x25   :  { %s19_s19 = sshll.u32 %s563_s18, 4  ;;  %s43_s22 = sshll.u32 %s564_s20, 4  ;;  %s20_s19 = int_to_ptr.vmem [resolvable:$true] %s19_s19  ;;  %s634_s22 = int_to_ptr.vmem [resolvable:$true] %s43_s22 }
  0x26   :  { %s463_s25 = scalar_lea.hbm %s713_s0, 512 }
  0x27   :  { %p464_p2 = scmp.ne.s32.totalorder %s713_s0, %s463_s25  ;;  %p467_p3 = scmp.lt.u32.totalorder %s463_s25, %s713_s0 }
  0x29   :  { %p469_p4 = pnand %p467_p3, %p464_p2 }
  0x2b   :  { %472 = shalt.err (!%p469_p4)
}
  0x2c   :  { %s473_s3 = scalar_lea.vmem %s20_s19, 512  ;;  %p478_p6 = scmp.lt.s32.totalorder %s20_s19, %s20_s19 }
  0x2d   :  { %p474_p5 = scmp.ne.s32.totalorder %s20_s19, %s473_s3  ;;  %p479_p7 = scmp.lt.s32.totalorder %s473_s3, %s473_s3 }
  0x2f   :  { %p480_p8 = por %p479_p7, %p478_p6 }
  0x31   :  { %p481_p9 = pnand %p480_p8, %p474_p5 }
  0x33   :  { %484 = shalt.err (!%p481_p9)
}
  0x34   :  { %25 = dma.hbm_to_vmem [thread:$0]  %s713_s0, 512, %s20_s19, [#allocation3], %s561_s30, %s561_s30, %s562_s6  }
  0x35   :  { %s485_s10 = scalar_lea.hbm %s715_s2, 512 }
  0x36   :  { %p486_p10 = scmp.ne.s32.totalorder %s715_s2, %s485_s10  ;;  %p489_p11 = scmp.lt.u32.totalorder %s485_s10, %s715_s2 }
  0x38   :  { %p491_p12 = pnand %p489_p11, %p486_p10 }
  0x3a   :  { %494 = shalt.err (!%p491_p12)
}
  0x3b   :  { %s495_s15 = scalar_lea.vmem %s634_s22, 512  ;;  %p500_p0 = scmp.lt.s32.totalorder %s634_s22, %s634_s22 }
  0x3c   :  { %p496_p13 = scmp.ne.s32.totalorder %s634_s22, %s495_s15  ;;  %p501_p1 = scmp.lt.s32.totalorder %s495_s15, %s495_s15 }
  0x3e   :  { %p502_p2 = por %p501_p1, %p500_p0 }
  0x40   :  { %p503_p3 = pnand %p502_p2, %p496_p13 }
  0x42   :  { %506 = shalt.err (!%p503_p3)
}
  0x43   :  { %49 = dma.hbm_to_vmem [thread:$0]  %s715_s2, 512, %s634_s22, [#allocation6], %s561_s30, %s561_s30, %s562_s6  }
  0x44   :  { %s565_s1 = smov [#allocation10]   ;;  %s507_s20 = scalar_lea.hbm %s717_s4, 512 }
  0x45   :  { %s67_s17 = sshll.u32 %s565_s1, 4  ;;  %p508_p4 = scmp.ne.s32.totalorder %s717_s4, %s507_s20  ;;  %s68_s17 = int_to_ptr.vmem [resolvable:$true] %s67_s17 }
  0x46   :  { %p511_p5 = scmp.lt.u32.totalorder %s507_s20, %s717_s4 }
  0x48   :  { %p513_p6 = pnand %p511_p5, %p508_p4 }
  0x4a   :  { %516 = shalt.err (!%p513_p6)
}
  0x4b   :  { %s517_s27 = scalar_lea.vmem %s68_s17, 512  ;;  %p522_p8 = scmp.lt.s32.totalorder %s68_s17, %s68_s17 }
  0x4c   :  { %p518_p7 = scmp.ne.s32.totalorder %s68_s17, %s517_s27  ;;  %p523_p9 = scmp.lt.s32.totalorder %s517_s27, %s517_s27 }
  0x4e   :  { %p524_p10 = por %p523_p9, %p522_p8 }
  0x50   :  { %p525_p11 = pnand %p524_p10, %p518_p7 }
  0x52   :  { %528 = shalt.err (!%p525_p11)
}
  0x53   :  { %73 = dma.hbm_to_vmem [thread:$0]  %s717_s4, 512, %s68_s17, [#allocation9], %s561_s30, %s561_s30, %s562_s6  }
  0x54   :  { %551 = dma.done.wait [#allocation3], 512  }
  0x55   :  { %552 = vsyncadd [#allocation3], 4294966784 }
  0x56   :  { %553 = dma.done.wait [#allocation6], 1024  }
  0x57   :  { %554 = vsyncadd [#allocation6], 4294966272 }
  0x58   :  { %555 = dma.done.wait [#allocation9], 1024  }
  0x59   :  { %556 = vsyncadd [#allocation9], 4294966272  ;;  %vm101_vm0 = vcmask 261120   ;;  %v93_v0 = vld [vmem:[#allocation5] sm:$0xff]  ;;  %v94_v1 = vld [vmem:[#allocation5 + $0x8] sm:$0xff]  ;;  %s566_s4 = smov [#allocation11]  }
  0x5a   :  { %v95_v2 = vld [vmem:[#allocation5 + $0x10] sm:$0xff]  ;;  %v395_v3 = vpack.c.bf16 %v94_v1, %v93_v0  ;;  %v96_v4 = vld [vmem:[#allocation5 + $0x18] sm:$0xff]  ;;  %v89_v5 = vld [vmem:[#allocation2] sm:$0xff]  ;;  %s329_s28 = sshll.u32 %s566_s4, 4  ;;  %s330_s28 = int_to_ptr.vmem [resolvable:$true] %s329_s28 }
  0x5b   :  { %v399_v6 = vpack.c.bf16 %v96_v4, %v95_v2  ;;  %375 = vmatprep.mubr.msk.f32.mxu0 %vm101_vm0, %v89_v5  ;;  %v207_v7 = vld [vmem:[#allocation8] sm:$0xff]  ;;  %v208_v8 = vld [vmem:[#allocation8 + $0x8] sm:$0xff]  ;;  %v91_v11 = vld [vmem:[#allocation2 + $0x10] sm:$0xff]  ;;  %s529_s29 = scalar_lea.vmem %s330_s28, 512  ;;  %p534_p13 = scmp.lt.s32.totalorder %s330_s28, %s330_s28 }
  0x5c   :  { %396 = vmatprep.subr.bf16.mxu0 %v395_v3  ;;  %v403_v9 = vpack.c.bf16 %v208_v8, %v207_v7  ;;  %v90_v10 = vld [vmem:[#allocation2 + $0x8] sm:$0xff]  ;;  %v92_v12 = vld [vmem:[#allocation2 + $0x18] sm:$0xff]  ;;  %v209_v13 = vld [vmem:[#allocation8 + $0x10] sm:$0xff]  ;;  %p530_p12 = scmp.ne.s32.totalorder %s330_s28, %s529_s29  ;;  %p535_p0 = scmp.lt.s32.totalorder %s529_s29, %s529_s29 }
  0x5d   :  { %398 = vmatpush3.bf16.msra.mxu0 %v395_v3  ;;  %v210_v14 = vld [vmem:[#allocation8 + $0x18] sm:$0xff]  ;;  %v97_v19 = vld [vmem:[#allocation7] sm:$0xff]  ;;  %v98_v20 = vld [vmem:[#allocation7 + $0x8] sm:$0xff] }
  0x5e   :  { %400 = vmatprep.subr.bf16.mxu0 %v399_v6  ;;  %404 = vmatprep.subr.bf16.mxu1 %v403_v9  ;;  %v407_v15 = vpack.c.bf16 %v210_v14, %v209_v13  ;;  %v99_v26 = vld [vmem:[#allocation7 + $0x10] sm:$0xff]  ;;  %v100_v28 = vld [vmem:[#allocation7 + $0x18] sm:$0xff]  ;;  %v212_v32 = vld [vmem:[#allocation10 + $0x8] sm:$0xff]  ;;  %p536_p1 = por %p535_p0, %p534_p13 }
  0x5f   :  { %406 = vmatpush3.bf16.msra.mxu1 %v403_v9  ;;  %v211_v35 = vld [vmem:[#allocation10] sm:$0xff]  ;;  %v214_v40 = vld [vmem:[#allocation10 + $0x18] sm:$0xff]  ;;  %v213_v43 = vld [vmem:[#allocation10 + $0x10] sm:$0xff] }
  0x60   :  { %408 = vmatprep.subr.bf16.mxu1 %v407_v15  ;;  %p537_p2 = pnand %p536_p1, %p530_p12 }
  0x61   :  { %402 = vmatpush3.bf16.msra.mxu0 %v399_v6 }
  0x63   :  { %410 = vmatpush3.bf16.msra.mxu1 %v407_v15 }
  0x64   :  { %376 = vmatmul.mubr.msk.f32.vlgmr.msra.gmra.mrb[0].mxu0 %vm101_vm0, %v90_v10 }
  0x65   :  { %378 = vmatprep.mubr.msk.f32.mxu0 %vm101_vm0, %v91_v11 }
  0x68   :  { %379 = vmatmul.mubr.msk.f32.gmra.mrb[2].mxu0 %vm101_vm0, %v92_v12 }
 0x137   :  { %v377_v16 = vpop.f32.mrb[0].mxu0 }
 0x138   :  { %v200_v17 = vmax.f32 %v377_v16, 0.0  ;;  %v180_v18 = vpop.f32.mrb[1].mxu0 }
 0x139   :  { %v199_v21 = vmax.f32 %v180_v18, 0.0 }
 0x13a   :  { %v204_v24 = vmul.f32 %v200_v17, %v98_v20 }
 0x13b   :  { %v380_v22 = vpop.f32.mrb[2].mxu0  ;;  %v203_v23 = vmul.f32 %v199_v21, %v97_v19 }
 0x13c   :  { %v202_v25 = vmax.f32 %v380_v22, 0.0  ;;  %v190_v27 = vpop.f32.mrb[3].mxu0 }
 0x13d   :  { %v201_v29 = vmax.f32 %v190_v27, 0.0  ;;  %389 = vmatprep.mubr.msk.f32.mxu1 %vm101_vm0, %v203_v23 }
 0x13e   :  { %390 = vmatmul.mubr.msk.f32.vlgmr.msra.gmra.mrb[0].mxu1 %vm101_vm0, %v204_v24  ;;  %v206_v31 = vmul.f32 %v202_v25, %v100_v28 }
 0x13f   :  { %v205_v30 = vmul.f32 %v201_v29, %v99_v26 }
 0x141   :  { %392 = vmatprep.mubr.msk.f32.mxu1 %vm101_vm0, %v205_v30 }
 0x142   :  { %393 = vmatmul.mubr.msk.f32.gmra.mrb[2].mxu1 %vm101_vm0, %v206_v31 }
 0x211   :  { %v391_v33 = vpop.f32.mrb[0].mxu1 }
 0x212   :  { %v313_v34 = vmax.f32 %v391_v33, 0.0  ;;  %v293_v36 = vpop.f32.mrb[1].mxu1 }
 0x213   :  { %v312_v37 = vmax.f32 %v293_v36, 0.0 }
 0x214   :  { %v317_v38 = vmul.f32 %v313_v34, %v212_v32 }
 0x215   :  { %v316_v39 = vmul.f32 %v312_v37, %v211_v35  ;;  %v394_v41 = vpop.f32.mrb[2].mxu1 }
 0x216   :  { %321 = vst.msk [vmem:[#allocation11 + $0x8] sm:$0xff] %vm101_vm0, %v317_v38  ;;  %v315_v42 = vmax.f32 %v394_v41, 0.0  ;;  %v303_v44 = vpop.f32.mrb[3].mxu1 }
 0x217   :  { %320 = vst.msk [vmem:[#allocation11] sm:$0xff] %vm101_vm0, %v316_v39  ;;  %v314_v45 = vmax.f32 %v303_v44, 0.0 }
 0x218   :  { %v319_v46 = vmul.f32 %v315_v42, %v214_v40 }
 0x219   :  { %v318_v47 = vmul.f32 %v314_v45, %v213_v43 }
 0x21a   :  { %323 = vst.msk [vmem:[#allocation11 + $0x18] sm:$0xff] %vm101_vm0, %v319_v46 }
 0x21b   :  { %322 = vst.msk [vmem:[#allocation11 + $0x10] sm:$0xff] %vm101_vm0, %v318_v47 }
 0x21c   :  { %540 = shalt.err (!%p537_p2)
}
 0x21d   :  { %s541_s7 = scalar_lea.hbm %s718_s5, 512 }
 0x21e   :  { %p542_p3 = scmp.ne.s32.totalorder %s718_s5, %s541_s7  ;;  %p545_p4 = scmp.lt.u32.totalorder %s541_s7, %s718_s5 }
 0x220   :  { %p547_p5 = pnand %p545_p4, %p542_p3 }
 0x222   :  { %550 = shalt.err (!%p547_p5)
}
 0x223   :  { %335 = dma.vmem_to_hbm [thread:$0]  %s330_s28, 512, %s718_s5, [#allocation4], %s561_s30, %s561_s30, %s562_s6  }
 0x224   :  { %557 = dma.done.wait [#allocation4], 512  }
 0x225   :  { %558 = vsyncadd [#allocation4], 4294966784 }
 0x226   :  { %339 = vsyncpa [#allocation3], 1 }
 0x227   :  { %340 = vsyncpa [#allocation6], 1 }
 0x228   :  { %341 = vsyncpa [#allocation9], 1 }
 0x229   :  { %342 = vsyncpa [#allocation4], 1 }

</bundles_post_ra>
